<compile_context>
chip_gen: v6e
topology: v6e:2x2x1
jax: 0.10.0
libtpu: 0.0.40
codegen_flags: <defaults>
</compile_context>

<pallas_src>
import functools

import jax
import jax.numpy as jnp
from jax.experimental import pallas as pl
from jax.experimental.pallas import tpu as pltpu

LANES = 128                    # lane width (last dim)
SUBLANES = 8                   # sublane granule
MIN_CHUNK = SUBLANES * LANES   # 1024 elems: minimum padding granule
MAX_TILE_R = 1024              # rows per grid step; (1024,128) f32 = 512 KiB/input


def _elementwise_loss(mode, a, b):
    """Elementwise loss in f32; a/b already widened."""
    if mode == "L2":
        d = a - b
        return d * d
    if mode == "L1":
        return jnp.abs(a - b)
    if mode == "BCE":
        # a = predictions in (0,1), b = targets. PyTorch BCELoss clamps the
        # log terms at -100 so exact 0/1 predictions stay finite.
        log_a = jnp.maximum(jnp.log(a), -100.0)
        log_1a = jnp.maximum(jnp.log(1.0 - a), -100.0)
        return -(b * log_a + (1.0 - b) * log_1a)
    if mode == "KL":
        # a = mu, b = logvar ; -0.5 * (1 + logvar - mu^2 - exp(logvar))
        return -0.5 * (1.0 + b - a * a - jnp.exp(b))
    raise ValueError(f"Invalid mode {mode}")


def _make_loss_kernel(mode, n, tile_r, needs_mask, scale):
    """Pallas kernel: scale * sum over valid elements of elementwise_loss(a, b)."""

    def kernel(a_ref, b_ref, out_ref, acc_ref):
        i = pl.program_id(0)

        @pl.when(i == 0)
        def _():
            acc_ref[...] = jnp.zeros_like(acc_ref)

        # Stream native dtype from HBM; widen in VMEM.
        a = a_ref[...].astype(jnp.float32)
        b = b_ref[...].astype(jnp.float32)
        e = _elementwise_loss(mode, a, b)

        if needs_mask:
            # Tail mask built in-kernel (no streamed mask array). Use where()
            # so garbage in padded / out-of-range rows cannot poison the sum.
            row_idx = jax.lax.broadcasted_iota(jnp.int32, (tile_r, LANES), 0)
            lane_idx = jax.lax.broadcasted_iota(jnp.int32, (tile_r, LANES), 1)
            elem_idx = (i * tile_r + row_idx) * LANES + lane_idx
            e = jnp.where(elem_idx < n, e, 0.0)

        # vreg-shaped partial accumulator: pure VALU adds on the hot path.
        acc_ref[...] += e

        # Single cross-lane/sublane reduction + mean scaling in the epilogue.
        @pl.when(i == pl.num_programs(0) - 1)
        def _():
            out_ref[...] = (jnp.sum(acc_ref[...]) * scale).reshape(1, 1)

    return kernel


@functools.partial(jax.jit, static_argnums=(0, 1))
def _pallas_loss(mode, reduction, a, b):
    """Reduction of elementwise loss over all elements of a/b via one Pallas kernel."""
    n = a.size                        # static under jit
    a_flat = a.reshape(-1)
    b_flat = b.reshape(-1)

    # Pad only to an 8x128 chunk boundary (no-op when already aligned).
    padded = ((n + MIN_CHUNK - 1) // MIN_CHUNK) * MIN_CHUNK
    pad = padded - n
    if pad:
        a_flat = jnp.pad(a_flat, (0, pad))
        b_flat = jnp.pad(b_flat, (0, pad))

    rows = padded // LANES            # multiple of 8
    tile_r = min(MAX_TILE_R, rows)    # multiple of 8, <= rows
    grid_len = pl.cdiv(rows, tile_r)

    # Mask (and its iota/compare/select VALU work) is compiled out entirely
    # when there is no padded tail and no ragged last block.
    needs_mask = (pad != 0) or (rows % tile_r != 0)
    scale = (1.0 / n) if reduction == "mean" else 1.0

    a2 = a_flat.reshape(rows, LANES)
    b2 = b_flat.reshape(rows, LANES)

    data_spec = pl.BlockSpec((tile_r, LANES), lambda i: (i, 0))

    out = pl.pallas_call(
        _make_loss_kernel(mode, n, tile_r, needs_mask, scale),
        out_shape=jax.ShapeDtypeStruct((1, 1), jnp.float32),
        grid_spec=pltpu.PrefetchScalarGridSpec(
            num_scalar_prefetch=0,
            grid=(grid_len,),
            in_specs=[data_spec, data_spec],
            out_specs=pl.BlockSpec((1, 1), lambda i: (0, 0)),
            scratch_shapes=[pltpu.VMEM((tile_r, LANES), jnp.float32)],
        ),
        compiler_params=pltpu.CompilerParams(
            dimension_semantics=("arbitrary",)),
    )(a2, b2)
    return out[0, 0]


class VAE_Loss:
    """JAX/Pallas port of the PyTorch VAE_Loss module."""

    def __init__(self, loss_weights):
        self.loss_weights = loss_weights

    def kl_divergence(self, mu, logvar):
        # sum reduction, computed entirely inside the Pallas kernel
        return _pallas_loss("KL", "sum", mu, logvar)

    def forward(self, loss_data):
        total_loss = 0.0
        losses_unscaled = {}
        losses_scaled = {}
        for k, v in loss_data.items():
            name, method = k.split("_")
            weight = self.loss_weights.get(k)
            if weight in [0, None]:
                continue
            if method == "L2":
                losses_unscaled[k] = _pallas_loss("L2", "mean", v["rec"], v["true"])
            elif method == "L1":
                losses_unscaled[k] = _pallas_loss("L1", "mean", v["rec"], v["true"])
            elif method == "KL":
                losses_unscaled[k] = self.kl_divergence(v["mu"], v["logvar"])
            elif method == "BCE":
                losses_unscaled[k] = _pallas_loss("BCE", "mean", v["rec"], v["true"])
            else:
                raise ValueError(
                    f"Invalid loss method '{method}' provided for loss component '{k}'.")
            losses_scaled[k] = weight * losses_unscaled[k]
            total_loss += losses_scaled[k]
        return (total_loss, losses_scaled, losses_unscaled)

    __call__ = forward


def _reference_forward(loss_weights, loss_data):
    """Pure-JAX reference to validate the Pallas path."""
    total = 0.0
    for k, v in loss_data.items():
        _, method = k.split("_")
        w = loss_weights.get(k)
        if w in [0, None]:
            continue
        if method == "L2":
            lu = jnp.mean((v["rec"] - v["true"]) ** 2)
        elif method == "L1":
            lu = jnp.mean(jnp.abs(v["rec"] - v["true"]))
        elif method == "KL":
            mu, lv = v["mu"], v["logvar"]
            lu = -0.5 * jnp.sum(1.0 + lv - mu ** 2 - jnp.exp(lv))
        elif method == "BCE":
            p, t = v["rec"], v["true"]
            lp = jnp.maximum(jnp.log(p), -100.0)
            l1p = jnp.maximum(jnp.log(1.0 - p), -100.0)
            lu = jnp.mean(-(t * lp + (1.0 - t) * l1p))
        total = total + w * lu
    return total


if __name__ == "__main__":
    key = jax.random.PRNGKey(0)
    k1, k2, k3, k4, k5, k6 = jax.random.split(key, 6)

    # Small shapes consistent with a VAE forward: images NCHW (2,1,16,16),
    # latent mu/logvar (2,8).
    rec_img = jax.random.normal(k1, (2, 1, 16, 16), jnp.float32)
    true_img = jax.random.normal(k2, (2, 1, 16, 16), jnp.float32)
    mu = jax.random.normal(k3, (2, 8), jnp.float32) * 0.5
    logvar = jax.random.normal(k4, (2, 8), jnp.float32) * 0.1
    rec_prob = jax.nn.sigmoid(jax.random.normal(k5, (2, 1, 16, 16), jnp.float32))
    true_prob = jax.nn.sigmoid(jax.random.normal(k6, (2, 1, 16, 16), jnp.float32))

    loss_weights = {
        "rec_L2": 1.0,
        "img_BCE": 0.5,
        "lat_L1": 0.25,
        "kl_KL": 0.1,
        "skip_L2": 0.0,   # zero weight -> must be skipped, like the PyTorch module
    }
    loss_data = {
        "rec_L2": {"rec": rec_img, "true": true_img},
        "img_BCE": {"rec": rec_prob, "true": true_prob},
        "lat_L1": {"rec": rec_img, "true": true_img},
        "kl_KL": {"mu": mu, "logvar": logvar},
        "skip_L2": {"rec": rec_img, "true": true_img},
    }

    vae_loss = VAE_Loss(loss_weights)
    total_loss, losses_scaled, losses_unscaled = vae_loss(loss_data)
    total_loss = jax.block_until_ready(total_loss)

    ref_total = jax.block_until_ready(_reference_forward(loss_weights, loss_data))
    assert jnp.allclose(total_loss, ref_total, rtol=1e-5, atol=1e-5), (
        total_loss, ref_total)
    assert "skip_L2" not in losses_scaled

    print("KERNEL_OK")
</pallas_src>

<mosaic_0001>
module attributes {stable_mosaic.version = 11 : i64} {
  func.func @kernel(%arg0: i32, %arg1: memref<8x128xf32, #tpu.memory_space<vmem>>, %arg2: memref<8x128xf32, #tpu.memory_space<vmem>>, %arg3: memref<1x1xf32, #tpu.memory_space<vmem>>, %arg4: memref<8x128xf32, #tpu.memory_space<vmem>>) attributes {dimension_semantics = [#tpu.dimension_semantics<arbitrary>], iteration_bounds = array<i64: 1>, scalar_prefetch = 0 : i64, scratch_operands = 1 : i64, tpu.core_type = #tpu.core_type<tc>, window_params = [{transform_indices = @transform_0, window_bounds = array<i64: 8, 128>}, {transform_indices = @transform_1, window_bounds = array<i64: 8, 128>}, {pipeline_mode = #tpu.pipeline_mode<synchronous>, transform_indices = @transform_2, window_bounds = array<i64: 1, 1>}]} {
    %c0_i32 = arith.constant 0 : i32
    %0 = arith.cmpi eq, %arg0, %c0_i32 : i32
    %1 = arith.extui %0 : i1 to i32
    %c0_i32_0 = arith.constant 0 : i32
    %2 = arith.cmpi ne, %1, %c0_i32_0 : i32
    scf.if %2 {
      %cst_10 = arith.constant 0.000000e+00 : f32
      %25 = vector.broadcast %cst_10 : f32 to vector<8x128xf32>
      %c0_11 = arith.constant 0 : index
      %c0_12 = arith.constant 0 : index
      %26 = vector.load %arg4[%c0_11, %c0_12] : memref<8x128xf32, #tpu.memory_space<vmem>>, vector<8x128xf32>
      tpu.vector_store %arg4[%c0_11, %c0_12], %25 {strides = array<i32>} : memref<8x128xf32, #tpu.memory_space<vmem>>, vector<8x128xf32>,
    } else {
    }
    %c0 = arith.constant 0 : index
    %c0_1 = arith.constant 0 : index
    %3 = vector.load %arg1[%c0, %c0_1] : memref<8x128xf32, #tpu.memory_space<vmem>>, vector<8x128xf32>
    %c0_2 = arith.constant 0 : index
    %c0_3 = arith.constant 0 : index
    %4 = vector.load %arg2[%c0_2, %c0_3] : memref<8x128xf32, #tpu.memory_space<vmem>>, vector<8x128xf32>
    %5 = arith.subf %3, %4 : vector<8x128xf32>
    %6 = arith.mulf %5, %5 : vector<8x128xf32>
    %7 = tpu.iota {dimensions = array<i32: 0>} : vector<8x128xi32>
    %8 = tpu.iota {dimensions = array<i32: 1>} : vector<8x128xi32>
    %c8_i32 = arith.constant 8 : i32
    %9 = arith.muli %arg0, %c8_i32 : i32
    %10 = vector.broadcast %9 : i32 to vector<8x128xi32>
    %11 = arith.addi %10, %7 : vector<8x128xi32>
    %c128_i32 = arith.constant 128 : i32
    %12 = vector.broadcast %c128_i32 : i32 to vector<8x128xi32>
    %13 = arith.muli %11, %12 : vector<8x128xi32>
    %14 = arith.addi %13, %8 : vector<8x128xi32>
    %c512_i32 = arith.constant 512 : i32
    %15 = vector.broadcast %c512_i32 : i32 to vector<8x128xi32>
    %16 = arith.cmpi slt, %14, %15 : vector<8x128xi32>
    %cst = arith.constant 0.000000e+00 : f32
    %17 = vector.broadcast %cst : f32 to vector<8x128xf32>
    %18 = arith.select %16, %6, %17 : vector<8x128xi1>, vector<8x128xf32>
    %c0_4 = arith.constant 0 : index
    %c0_5 = arith.constant 0 : index
    %19 = vector.load %arg4[%c0_4, %c0_5] : memref<8x128xf32, #tpu.memory_space<vmem>>, vector<8x128xf32>
    %20 = arith.addf %19, %18 : vector<8x128xf32>
    %c0_6 = arith.constant 0 : index
    %c0_7 = arith.constant 0 : index
    %21 = vector.load %arg4[%c0_6, %c0_7] : memref<8x128xf32, #tpu.memory_space<vmem>>, vector<8x128xf32>
    tpu.vector_store %arg4[%c0_6, %c0_7], %20 {strides = array<i32>} : memref<8x128xf32, #tpu.memory_space<vmem>>, vector<8x128xf32>,
    %c0_i32_8 = arith.constant 0 : i32
    %22 = arith.cmpi eq, %arg0, %c0_i32_8 : i32
    %23 = arith.extui %22 : i1 to i32
    %c0_i32_9 = arith.constant 0 : i32
    %24 = arith.cmpi ne, %23, %c0_i32_9 : i32
    scf.if %24 {
      %c0_10 = arith.constant 0 : index
      %c0_11 = arith.constant 0 : index
      %25 = vector.load %arg4[%c0_10, %c0_11] : memref<8x128xf32, #tpu.memory_space<vmem>>, vector<8x128xf32>
      %26 = vector.shape_cast %25 : vector<8x128xf32> to vector<1x8x128xf32>
      %cst_12 = arith.constant dense<0.000000e+00> : vector<1xf32>
      %27 = vector.multi_reduction <add>, %26, %cst_12 [1, 2] : vector<1x8x128xf32> to vector<1xf32>
      %28 = vector.shape_cast %27 : vector<1xf32> to vector<1x1x1xf32>
      %29 = vector.extract %28[0, 0, 0] : f32 from vector<1x1x1xf32>
      %cst_13 = arith.constant 0.001953125 : f32
      %30 = arith.mulf %29, %cst_13 : f32
      %31 = vector.broadcast %30 : f32 to vector<1x1xf32>
      %c0_14 = arith.constant 0 : index
      %c0_15 = arith.constant 0 : index
      %32 = vector.load %arg3[%c0_14, %c0_15] : memref<1x1xf32, #tpu.memory_space<vmem>>, vector<1x1xf32>
      tpu.vector_store %arg3[%c0_14, %c0_15], %31 {strides = array<i32>} : memref<1x1xf32, #tpu.memory_space<vmem>>, vector<1x1xf32>,
    } else {
    }
    return
  }
  func.func @transform_0(%arg0: i32) -> (i32, i32) {
    %c0_i32 = arith.constant 0 : i32
    %c0_i32_0 = arith.constant 0 : i32
    return %arg0, %c0_i32 : i32, i32
  }
  func.func @transform_1(%arg0: i32) -> (i32, i32) {
    %c0_i32 = arith.constant 0 : i32
    %c0_i32_0 = arith.constant 0 : i32
    return %arg0, %c0_i32 : i32, i32
  }
  func.func @transform_2(%arg0: i32) -> (i32, i32) {
    %c0_i32 = arith.constant 0 : i32
    %c0_i32_0 = arith.constant 0 : i32
    %c0_i32_1 = arith.constant 0 : i32
    return %c0_i32, %c0_i32_0 : i32, i32
  }
}

</mosaic_0001>

<bundles_post_ra>
// kernel: _pallas_loss.1
= control target key start
LH: loop header
LB: loop body
LE: loop exit
PB: predicated region body
PF: predicated region fallthrough
CT: control target
= control target key end

     0   :  { %v21_v2 = vlaneseq  ;;  %s116_s0 = inlined_call_operand.vmem [shape: f32[8,128], index: 0, kind: input, shape index: {}]   ;;  %s117_s1 = inlined_call_operand.vmem [shape: f32[8,128], index: 1, kind: input, shape index: {}]   ;;  %s118_s2 = inlined_call_operand.hbm [shape: f32[1,1], index: 2, kind: output, shape index: {}]  }
   0x1   :  { %v17_v0 = vld [vmem:[%s116_s0] sm:$0xff] }
   0x2   :  { %v18_v1 = vld [vmem:[%s117_s1] sm:$0xff] }
   0x3   :  { %7 = vsyncpa [#allocation4], 0  ;;  %v19_v3 = vsub.f32 %v17_v0, %v18_v1  ;;  %v22_v4 = vshrl.u32 %v21_v2, 7  ;;  %v24_v5 = vand.u32 127, %v21_v2  ;;  %s91_s0 = smov [#allocation3]   ;;  %vm50_vm1 = vcmask 0  }
   0x4   :  { %s58_s1 = sshll.u32 %s91_s0, 4  ;;  %s59_s1 = int_to_ptr.vmem [resolvable:$true] %s58_s1 }
   0x5   :  { %v28_v6 = vmul.u32 128, %v22_v4  ;;  %v20_v7 = vmul.f32 %v19_v3, %v19_v3  ;;  %s69_s15 = scalar_lea.vmem %s59_s1, 16  ;;  %s73_s16 = scalar_lea.vmem %s59_s1, 32 }
   0x6   :  { %p70_p0 = scmp.ne.s32.totalorder %s59_s1, %s69_s15  ;;  %p74_p1 = scmp.lt.s32.totalorder %s59_s1, %s59_s1 }
   0x7   :  { %v29_v8 = vadd.s32 %v28_v6, %v24_v5  ;;  %p75_p2 = scmp.lt.s32.totalorder %s73_s16, %s69_s15 }
   0x9   :  { %vm30_vm0 = vcmp.lt.s32.totalorder %v29_v8, 512  ;;  %p76_p3 = por %p75_p2, %p74_p1 }
   0xa   :  { %v31_v9 = vsel %vm30_vm0, %v20_v7, 0.0 }
   0xb   :  { %39 = vadd.xlane.f32.xlu0 %v31_v9  ;;  %p77_p4 = pnand %p76_p3, %p70_p0 }
  0x94   :  { %v40_v10 = vpop.xlane.xlu0 %39 }
  0x95   :  { %v41_v11 = vrot.slane %v40_v10, 4 }
  0x97   :  { %v42_v12 = vadd.f32 %v41_v11, %v40_v10 }
  0x99   :  { %v43_v13 = vrot.slane %v42_v12, 2 }
  0x9b   :  { %v44_v14 = vadd.f32 %v43_v13, %v42_v12 }
  0x9d   :  { %v45_v15 = vrot.slane %v44_v14, 1 }
  0x9f   :  { %v46_v16 = vadd.f32 %v45_v15, %v44_v14 }
  0xa1   :  { %66 = vpush %v46_v16 }
  0xd2   :  { %s67_s13 = spop %66 }
  0xd3   :  { %s48_s14 = smul.f32 0.001953125, %s67_s13 }
  0xd5   :  { %v49_v17 = vstv %s48_s14 }
  0xd6   :  { %51 = vst.msk [vmem:[#allocation3] sm:$0x1] %vm50_vm1, %v49_v17 }
  0xd7   :  { %80 = shalt.err (!%p77_p4)
}
  0xd8   :  { %61 = dma.vmem_to_hbm [thread:$0]  %s59_s1, 16, %s118_s2, [#allocation4]  }
  0xd9   :  { %89 = dma.done.wait [#allocation4], 16  }
  0xda   :  { %90 = vsyncadd [#allocation4], 4294967280 }
  0xdb   :  { %65 = vsyncpa [#allocation4], 1 }

</bundles_post_ra>
